<compile_context>
chip_gen: v7x
topology: tpu7x:2x2x1
jax: 0.10.0
libtpu: 0.0.40
codegen_flags: <defaults>
</compile_context>

<pallas_src>
import functools
import numpy as np
import jax
import jax.numpy as jnp
from jax import lax
from jax.experimental import pallas as pl
from jax.experimental.pallas import tpu as pltpu


def _round_up(x, m):
    return ((x + m - 1) // m) * m


def _time_encode_kernel(*refs, has_bias):
    if has_bias:
        t_ref, w_ref, b_ref, o_ref = refs
    else:
        t_ref, w_ref, o_ref = refs
    # t_ref: (K, block_rows)   K = pack rounded up to 8 sublanes (padding rows are zero)
    # w_ref: (K, lanes)        row k = w placed in lane slot k, zeros elsewhere
    # o_ref: (block_rows, lanes)
    # arg[r, c] = sum_k t[k, r] * w[k, c]   == t^T @ W  (one tiny-K MXU pass per block)
    arg = lax.dot_general(
        t_ref[...], w_ref[...],
        dimension_numbers=(((0,), (0,)), ((), ())),
        preferred_element_type=jnp.float32)
    if has_bias:
        arg = arg + b_ref[...]                      # (1, lanes) sublane-broadcast add
    o_ref[...] = jnp.cos(arg).astype(o_ref.dtype)


def time_encode(t, weight, bias=None, *, max_block_rows=4096, out_dtype=jnp.float32):
    """TimeEncode forward.

    t: any shape; weight: (dim, 1); bias: (dim,) or None.  Returns
    cos(t.reshape(-1, 1) @ weight.T + bias) with shape (N, dim) in `out_dtype`.
    Pass out_dtype=jnp.bfloat16 to halve HBM writeback when downstream allows it.
    """
    dim = int(weight.shape[0])
    t_flat = jnp.asarray(t, jnp.float32).reshape(-1)
    n = t_flat.shape[0]
    has_bias = bias is not None                      # static (jit-safe) gate

    if n == 0:                                       # degenerate-input early out
        return jnp.zeros((0, dim), out_dtype)

    # ---- lane packing -------------------------------------------------------
    if dim <= 128 and 128 % dim == 0:
        pack, dim_pad = 128 // dim, dim              # pack timestamps per 128-lane row
    else:
        pack, dim_pad = 1, _round_up(dim, 128)       # zero-pad lanes, slice after call
    lanes = pack * dim_pad
    kdim = _round_up(pack, 8)                        # contraction dim, sublane-aligned

    # ---- row tiling / grid --------------------------------------------------
    rows_needed = -(-n // pack)
    rows_8 = max(8, _round_up(rows_needed, 8))
    out_bytes_per_row = lanes * jnp.dtype(out_dtype).itemsize
    vmem_cap_rows = max(128, ((4 * 1024 * 1024) // out_bytes_per_row) // 128 * 128)
    max_block_rows = max(128, (int(max_block_rows) // 128) * 128)
    max_block_rows = min(max_block_rows, vmem_cap_rows)
    min_steps = 2 if rows_8 >= 256 else 1            # let v7x use both TensorCores
    steps = max(min_steps, -(-rows_8 // max_block_rows))
    if steps == 1:
        block_rows = rows_8                          # full-extent block (mult of 8) is legal
    else:
        block_rows = _round_up(-(-rows_8 // steps), 128)   # lane dim of the t block
    rows_padded = block_rows * steps
    n_padded = rows_padded * pack

    # ---- operand construction ----------------------------------------------
    # t carried transposed: t_t[k, r] = t[r*pack + k]; zero rows pad K to `kdim`.
    t_t = jnp.pad(t_flat, (0, n_padded - n)).reshape(rows_padded, pack).T
    t_t = jnp.pad(t_t, ((0, kdim - pack), (0, 0)))
    # Block-diagonal weight slab: w_rows[k, k*dim_pad + j] = w[j] for k < pack.
    w_lane = jnp.zeros((dim_pad,), jnp.float32).at[:dim].set(
        jnp.asarray(weight, jnp.float32).reshape(dim))
    w_rows = jnp.kron(jnp.eye(pack, dtype=jnp.float32), w_lane.reshape(1, dim_pad))
    w_rows = jnp.pad(w_rows, ((0, kdim - pack), (0, 0)))

    inputs = [t_t, w_rows]
    in_specs = [
        pl.BlockSpec((kdim, block_rows), lambda i: (0, i)),
        pl.BlockSpec((kdim, lanes), lambda i: (0, 0)),
    ]
    if has_bias:
        b_lane = jnp.zeros((dim_pad,), jnp.float32).at[:dim].set(
            jnp.asarray(bias, jnp.float32).reshape(dim))
        inputs.append(jnp.tile(b_lane, pack).reshape(1, lanes))
        in_specs.append(pl.BlockSpec((1, lanes), lambda i: (0, 0)))

    out_packed = pl.pallas_call(
        functools.partial(_time_encode_kernel, has_bias=has_bias),
        out_shape=jax.ShapeDtypeStruct((rows_padded, lanes), out_dtype),
        grid_spec=pltpu.PrefetchScalarGridSpec(
            num_scalar_prefetch=0,
            grid=(steps,),
            in_specs=in_specs,
            out_specs=pl.BlockSpec((block_rows, lanes), lambda i: (i, 0)),
        ),
        compiler_params=pltpu.CompilerParams(
            dimension_semantics=("parallel",)),
    )(*inputs)

    # ---- unpack back to (N, dim) -------------------------------------------
    if pack > 1:        # lanes == pack*dim: free row-major reshape, drop pad rows
        return out_packed.reshape(rows_padded * pack, dim)[:n]
    return out_packed[:n, :dim]                      # drop zero-padded lanes


def make_time_encode_params(dim):
    # Deterministic init matching reset_parameters():
    #   W = (1 / 10 ** linspace(0, 9, dim)).reshape(dim, 1), b = 0
    w = (1.0 / 10.0 ** np.linspace(0, 9, dim, dtype=np.float32)).reshape(dim, 1)
    b = np.zeros((dim,), dtype=np.float32)
    return jnp.asarray(w), jnp.asarray(b)


if __name__ == "__main__":
    dim = 32
    batch, seq = 2, 8                                 # N = 16 timestamps
    key = jax.random.PRNGKey(0)
    t = jax.random.uniform(key, (batch, seq), dtype=jnp.float32)

    weight, bias = make_time_encode_params(dim)
    ref = jnp.cos(t.reshape(-1, 1) * weight.reshape(1, -1) + bias)

    # Small case (packed 128-lane layout, single grid step).
    out = jax.block_until_ready(time_encode(t, weight, bias))
    assert out.shape == (batch * seq, dim)
    np.testing.assert_allclose(np.asarray(out), np.asarray(ref), rtol=1e-5, atol=1e-5)

    # Same call under jit (exercises the static `bias is not None` gate).
    out_j = jax.block_until_ready(jax.jit(time_encode)(t, weight, bias))
    np.testing.assert_allclose(np.asarray(out_j), np.asarray(ref), rtol=1e-5, atol=1e-5)

    # Ragged / larger case: padding + multi-step grid + large-magnitude timestamps.
    t2 = jax.random.uniform(jax.random.PRNGKey(1), (1000,), dtype=jnp.float32) * 100.0
    ref2 = jnp.cos(t2.reshape(-1, 1) * weight.reshape(1, -1) + bias)
    out2 = jax.block_until_ready(time_encode(t2, weight, bias))
    assert out2.shape == (1000, dim)
    # MXU f32 dot uses bf16-pass decomposition: argument error ~ |t*w| * 2^-21.
    np.testing.assert_allclose(np.asarray(out2), np.asarray(ref2), rtol=1e-5, atol=3e-4)

    # dim that does not divide 128 (lane-padded weight path), no bias.
    dim3 = 48
    w3, _ = make_time_encode_params(dim3)
    t3 = jax.random.uniform(jax.random.PRNGKey(2), (100,), dtype=jnp.float32) * 10.0
    ref3 = jnp.cos(t3.reshape(-1, 1) * w3.reshape(1, -1))
    out3 = jax.block_until_ready(time_encode(t3, w3, None))
    assert out3.shape == (100, dim3)
    np.testing.assert_allclose(np.asarray(out3), np.asarray(ref3), rtol=1e-5, atol=5e-5)

    # bf16 output path (halves HBM writeback); argument stays f32, only the store casts.
    out_bf16 = jax.block_until_ready(time_encode(t, weight, bias, out_dtype=jnp.bfloat16))
    np.testing.assert_allclose(np.asarray(out_bf16.astype(jnp.float32)), np.asarray(ref),
                               rtol=1e-2, atol=1e-2)

    print("KERNEL_OK")
</pallas_src>

<mosaic_0001>
module attributes {stable_mosaic.version = 11 : i64} {
  func.func @_time_encode_kernel(%arg0: i32, %arg1: memref<8x8xf32, #tpu.memory_space<vmem>>, %arg2: memref<8x128xf32, #tpu.memory_space<vmem>>, %arg3: memref<1x128xf32, #tpu.memory_space<vmem>>, %arg4: memref<8x128xf32, #tpu.memory_space<vmem>>) attributes {dimension_semantics = [#tpu.dimension_semantics<parallel>], iteration_bounds = array<i64: 1>, scalar_prefetch = 0 : i64, scratch_operands = 0 : i64, tpu.core_type = #tpu.core_type<tc>, window_params = [{transform_indices = @transform_0, window_bounds = array<i64: 8, 8>}, {pipeline_mode = #tpu.pipeline_mode<synchronous>, transform_indices = @transform_1, window_bounds = array<i64: 8, 128>}, {pipeline_mode = #tpu.pipeline_mode<synchronous>, transform_indices = @transform_2, window_bounds = array<i64: 1, 128>}, {transform_indices = @transform_3, window_bounds = array<i64: 8, 128>}]} {
    %c0 = arith.constant 0 : index
    %c0_0 = arith.constant 0 : index
    %0 = vector.load %arg1[%c0, %c0_0] : memref<8x8xf32, #tpu.memory_space<vmem>>, vector<8x8xf32>
    %c0_1 = arith.constant 0 : index
    %c0_2 = arith.constant 0 : index
    %1 = vector.load %arg2[%c0_1, %c0_2] : memref<8x128xf32, #tpu.memory_space<vmem>>, vector<8x128xf32>
    %cst = arith.constant dense<0.000000e+00> : vector<8x128xf32>
    %2 = tpu.matmul %0, %1, %cst {dimension_numbers = #tpu.dot_dimension_numbers<[0], [0], [1], [1], [0, 1, 1, 1], [], []>} : vector<8x8xf32>, vector<8x128xf32>, vector<8x128xf32> -> vector<8x128xf32>
    %c0_3 = arith.constant 0 : index
    %c0_4 = arith.constant 0 : index
    %3 = vector.load %arg3[%c0_3, %c0_4] : memref<1x128xf32, #tpu.memory_space<vmem>>, vector<1x128xf32>
    %4 = vector.broadcast %3 : vector<1x128xf32> to vector<8x128xf32>
    %5 = arith.addf %2, %4 : vector<8x128xf32>
    %6 = math.cos %5 : vector<8x128xf32>
    %c0_5 = arith.constant 0 : index
    %c0_6 = arith.constant 0 : index
    %7 = vector.load %arg4[%c0_5, %c0_6] : memref<8x128xf32, #tpu.memory_space<vmem>>, vector<8x128xf32>
    tpu.vector_store %arg4[%c0_5, %c0_6], %6 {strides = array<i32>} : memref<8x128xf32, #tpu.memory_space<vmem>>, vector<8x128xf32>,
    return
  }
  func.func @transform_0(%arg0: i32) -> (i32, i32) {
    %c0_i32 = arith.constant 0 : i32
    %c0_i32_0 = arith.constant 0 : i32
    return %c0_i32, %arg0 : i32, i32
  }
  func.func @transform_1(%arg0: i32) -> (i32, i32) {
    %c0_i32 = arith.constant 0 : i32
    %c0_i32_0 = arith.constant 0 : i32
    %c0_i32_1 = arith.constant 0 : i32
    return %c0_i32, %c0_i32_0 : i32, i32
  }
  func.func @transform_2(%arg0: i32) -> (i32, i32) {
    %c0_i32 = arith.constant 0 : i32
    %c0_i32_0 = arith.constant 0 : i32
    %c0_i32_1 = arith.constant 0 : i32
    return %c0_i32, %c0_i32_0 : i32, i32
  }
  func.func @transform_3(%arg0: i32) -> (i32, i32) {
    %c0_i32 = arith.constant 0 : i32
    %c0_i32_0 = arith.constant 0 : i32
    return %arg0, %c0_i32 : i32, i32
  }
}

</mosaic_0001>

<bundles_post_ra>
// kernel: tpu_custom_call.1
= control target key start
LH: loop header
LB: loop body
LE: loop exit
PB: predicated region body
PF: predicated region fallthrough
CT: control target
= control target key end

     0   :  { %8 = vsyncpa [#allocation3], 0  ;;  %s469_s0 = inlined_call_operand.hbm [shape: f32[8,8], index: 0, kind: input, shape index: {}]   ;;  %s470_s1 = inlined_call_operand.hbm [shape: f32[8,128], index: 1, kind: input, shape index: {}]   ;;  %s471_s2 = inlined_call_operand.vmem [shape: f32[1,128], index: 2, kind: input, shape index: {}]   ;;  %s472_s3 = inlined_call_operand.hbm [shape: f32[8,128], index: 3, kind: output, shape index: {}]  }
   0x1   :  { %9 = vsyncpa [#allocation6], 0 }
   0x2   :  { %10 = vsyncpa [#allocation4], 0  ;;  %s378_s12 = smov [#allocation2]   ;;  %s379_s14 = smov [#allocation5]  }
   0x3   :  { %s17_s13 = sshll.u32 %s378_s12, 4  ;;  %s27_s15 = sshll.u32 %s379_s14, 4  ;;  %s18_s13 = int_to_ptr.vmem [resolvable:$true] %s17_s13  ;;  %s28_s15 = int_to_ptr.vmem [resolvable:$true] %s27_s15 }
   0x4   :  { %s306_s18 = scalar_lea.hbm %s469_s0, 128 }
   0x5   :  { %p307_p0 = scmp.ne.s32.totalorder %s469_s0, %s306_s18  ;;  %p310_p1 = scmp.lt.u32.totalorder %s306_s18, %s469_s0 }
   0x7   :  { %p312_p2 = pnand %p310_p1, %p307_p0 }
   0x9   :  { %315 = shalt.err (!%p312_p2)
}
   0xa   :  { %s316_s23 = scalar_lea.vmem %s18_s13, 128  ;;  %p321_p4 = scmp.lt.s32.totalorder %s18_s13, %s18_s13 }
   0xb   :  { %p317_p3 = scmp.ne.s32.totalorder %s18_s13, %s316_s23  ;;  %p322_p5 = scmp.lt.s32.totalorder %s316_s23, %s316_s23 }
   0xd   :  { %p323_p6 = por %p322_p5, %p321_p4 }
   0xf   :  { %p324_p7 = pnand %p323_p6, %p317_p3 }
  0x11   :  { %327 = shalt.err (!%p324_p7)
}
  0x12   :  { %20 = dma.hbm_to_vmem [thread:$0]  %s469_s0, 128, %s18_s13, [#allocation3]  }
  0x13   :  { %s328_s28 = scalar_lea.hbm %s470_s1, 128 }
  0x14   :  { %p329_p8 = scmp.ne.s32.totalorder %s470_s1, %s328_s28  ;;  %p332_p9 = scmp.lt.u32.totalorder %s328_s28, %s470_s1 }
  0x16   :  { %p334_p10 = pnand %p332_p9, %p329_p8 }
  0x18   :  { %337 = shalt.err (!%p334_p10)
}
  0x19   :  { %s338_s6 = scalar_lea.vmem %s28_s15, 128  ;;  %p343_p12 = scmp.lt.s32.totalorder %s28_s15, %s28_s15 }
  0x1a   :  { %p339_p11 = scmp.ne.s32.totalorder %s28_s15, %s338_s6  ;;  %p344_p13 = scmp.lt.s32.totalorder %s338_s6, %s338_s6 }
  0x1c   :  { %p345_p0 = por %p344_p13, %p343_p12 }
  0x1e   :  { %p346_p1 = pnand %p345_p0, %p339_p11 }
  0x20   :  { %349 = shalt.err (!%p346_p1)
}
  0x21   :  { %30 = dma.hbm_to_vmem [thread:$0]  %s470_s1, 128, %s28_s15, [#allocation6]  }
  0x22   :  { %372 = dma.done.wait [#allocation3], 128  }
  0x23   :  { %373 = vsyncadd [#allocation3], 4294967168 }
  0x24   :  { %374 = dma.done.wait [#allocation6], 128  }
  0x25   :  { %375 = vsyncadd [#allocation6], 4294967168  ;;  %v380_v0 = vmov 0.0   ;;  %vm381_vm0 = vmmov 0   ;;  %v39_v1 = vld [vmem:[#allocation2] sm:$0xff]  ;;  %v40_v2 = vld [vmem:[#allocation5] sm:$0xff] }
  0x26   :  { %282 = vmatprep.subr.mxu0 %v380_v0  ;;  %284 = vmatprep.mubr.msk.f32.mxu0 %vm381_vm0, %v380_v0  ;;  %vm80_vm1 = vcmask 64512   ;;  %v274_v4 = vld [vmem:[%s471_s2] ss:$0 sm:$0xff]  ;;  %v382_v18 = vmov 683565275   ;;  %s388_s1 = smov [#allocation7]  }
  0x27   :  { %48 = vxpose.xlu0.b32.start.end [1/1] (short) (narrow) %v39_v1, 8  ;;  %283 = vmatpush3.msra.mxu0 %v40_v2  ;;  %v383_v20 = vmov 2475754826   ;;  %v384_v23 = vmov 2131351028   ;;  %s264_s2 = sshll.u32 %s388_s1, 4  ;;  %s265_s2 = int_to_ptr.vmem [resolvable:$true] %s264_s2 }
  0x28   :  { %v385_v26 = vmov 2102212464   ;;  %v386_v29 = vmov 920167782   ;;  %v387_v32 = vmov 1326507024   ;;  %p355_p3 = scmp.lt.s32.totalorder %s265_s2, %s265_s2 }
  0x29   :  { %s350_s10 = scalar_lea.vmem %s265_s2, 128 }
  0x2a   :  { %p351_p2 = scmp.ne.s32.totalorder %s265_s2, %s350_s10  ;;  %p356_p4 = scmp.lt.s32.totalorder %s350_s10, %s350_s10 }
  0x2c   :  { %p357_p5 = por %p356_p4, %p355_p3 }
  0x2e   :  { %p358_p6 = pnand %p357_p5, %p351_p2 }
  0xa7   :  { %v64_v3 = vpop.trf.xlu0 }
  0xa8   :  { %285 = vmatmul.mubr.msk.f32.vlgmr.msra.gmra.mrb[0].mxu0 %vm80_vm1, %v64_v3 }
 0x17b   :  { %v150_v5 = vpop.f32.mrb[0].mxu0 }
 0x17c   :  { %v436_v6 = vadd.f32 %v274_v4, %v150_v5  ;;  %v286_v7 = vpop.f32.mrb[1].mxu0 }
 0x17e   :  { %v157_v8 = vand.u32 2139095040, %v436_v6  ;;  %v154_v12 = vand.u32 2147483647, %v436_v6  ;;  %vm156_vm9 = vcmp.lt.s32.totalorder %v436_v6, 0  ;;  %vm246_vm14 = vweird.f32 %v436_v6 }
 0x180   :  { %v158_v9 = vshrl.u32 %v157_v8, 23  ;;  %v161_v15 = vand.u32 8388607, %v154_v12  ;;  %vm155_vm10 = vcmp.le.f32.partialorder %v154_v12, 0.7853982 }
 0x182   :  { %v276_v10 = vadd.s32 4294967169, %v158_v9  ;;  %v162_v34 = vor.u32 8388608, %v161_v15 }
 0x184   :  { %v164_v11 = vadd.s32 1, %v276_v10  ;;  %v202_v48 = vshll.u32 %v162_v34, 8 }
 0x186   :  { %vm165_vm2 = vcmp.gt.s32.totalorder %v164_v11, 0 }
 0x187   :  { %v166_v13 = vsel %vm165_vm2, %v164_v11, 0 }
 0x188   :  { %v168_v14 = vand.u32 31, %v166_v13  ;;  %v167_v17 = vshrl.u32 %v166_v13, 5 }
 0x18a   :  { %v169_v16 = vsub.s32 32, %v168_v14  ;;  %v171_v19 = vshll.u32 %v382_v18, %v168_v14  ;;  %v174_v21 = vshll.u32 %v383_v20, %v168_v14  ;;  %v177_v25 = vshll.u32 %v384_v23, %v168_v14 }
 0x18b   :  { %v180_v28 = vshll.u32 %v385_v26, %v168_v14  ;;  %v183_v31 = vshll.u32 %v386_v29, %v168_v14  ;;  %vm186_vm3 = vcmp.lt.s32.totalorder %v167_v17, 1  ;;  %vm189_vm4 = vcmp.lt.s32.totalorder %v167_v17, 4 }
 0x18c   :  { %v172_v22 = vshrl.u32 %v383_v20, %v169_v16  ;;  %v175_v24 = vshrl.u32 %v384_v23, %v169_v16  ;;  %v178_v27 = vshrl.u32 %v385_v26, %v169_v16  ;;  %v181_v30 = vshrl.u32 %v386_v29, %v169_v16 }
 0x18d   :  { %v184_v33 = vshrl.u32 %v387_v32, %v169_v16  ;;  %v170_v43 = vshrl.u32 %v382_v18, %v169_v16  ;;  %vm188_vm5 = vcmp.lt.s32.totalorder %v167_v17, 3  ;;  %vm187_vm6 = vcmp.lt.s32.totalorder %v167_v17, 2 }
 0x18e   :  { %v173_v35 = vor.u32 %v172_v22, %v171_v19  ;;  %v176_v36 = vor.u32 %v175_v24, %v174_v21  ;;  %v179_v37 = vor.u32 %v178_v27, %v177_v25  ;;  %v182_v38 = vor.u32 %v181_v30, %v180_v28 }
 0x18f   :  { %v185_v39 = vor.u32 %v184_v33, %v183_v31 }
 0x190   :  { %v191_v40 = vsel %vm189_vm4, %v179_v37, 2102212464  ;;  %v194_v41 = vsel %vm186_vm3, %v173_v35, %v176_v36  ;;  %v198_v42 = vsel %vm186_vm3, %v176_v36, %v179_v37  ;;  %v195_v44 = vsel %vm189_vm4, %v182_v38, 920167782 }
 0x191   :  { %v199_v45 = vsel %vm189_vm4, %v185_v39, 1326507024  ;;  %v196_v46 = vsel %vm188_vm5, %v179_v37, %v195_v44  ;;  %v190_v49 = vsel %vm186_vm3, %v170_v43, %v173_v35  ;;  %v192_v50 = vsel %vm188_vm5, %v176_v36, %v191_v40 }
 0x192   :  { %v200_v47 = vsel %vm188_vm5, %v182_v38, %v199_v45  ;;  %v197_v51 = vsel %vm187_vm6, %v194_v41, %v196_v46  ;;  %v193_v57 = vsel %vm187_vm6, %v190_v49, %v192_v50 }
 0x193   :  { %v201_v52 = vsel %vm187_vm6, %v198_v42, %v200_v47  ;;  %v445_v55 = vmul.u32.u64.low %v202_v48, %v197_v51  ;;  %v446_v56 = vmul.u32.u64.high %v202_v48, %v197_v51, %v445_v55  ;;  %v209_v59 = vmul.u32 %v202_v48, %v193_v57 }
 0x194   :  { %v442_v53 = vmul.u32.u64.low %v202_v48, %v201_v52  ;;  %v443_v54 = vmul.u32.u64.high %v202_v48, %v201_v52, %v442_v53 }
 0x195   :  { %v212_v58 = vadd.s32 1, %v446_v56 }
 0x196   :  { %vm211_vm7 = vc.u32 %v443_v54, %v445_v55  ;;  %v210_v8 = vadd.s32 %v445_v55, %v443_v54 }
 0x197   :  { %v213_v60 = vsel %vm211_vm7, %v212_v58, %v446_v56 }
 0x198   :  { %v214_v61 = vadd.s32 %v213_v60, %v209_v59 }
 0x19a   :  { %v215_v62 = vadd.s32 536870912, %v214_v61 }
 0x19c   :  { %v216_v63 = vshrl.u32 %v215_v62, 30 }
 0x19e   :  { %v217_v0 = vshll.u32 %v216_v63, 30  ;;  %v240_v23 = vsub.s32 4, %v216_v63 }
 0x1a0   :  { %v218_v1 = vsub.s32 %v214_v61, %v217_v0  ;;  %v241_v25 = vsel %vm156_vm9, %v240_v23, %v216_v63 }
 0x1a1   :  { %v243_v26 = vsel %vm155_vm10, 0, %v241_v25 }
 0x1a2   :  { %v220_v2 = vsub.s32 0, %v218_v1  ;;  %v247_v27 = vand.u32 3, %v243_v26 }
 0x1a4   :  { %v277_v3 = vmin.u32 %v220_v2, %v218_v1  ;;  %vm252_vm11 = vcmp.eq.s32.totalorder %v247_v27, 2  ;;  %vm249_vm12 = vcmp.eq.s32.totalorder %v247_v27, 0  ;;  %vm248_vm13 = vcmp.lt.s32.totalorder %v247_v27, 2 }
 0x1a6   :  { %v222_v4 = vclz %v277_v3 }
 0x1a8   :  { %v278_v5 = vadd.s32 4294967294, %v222_v4 }
 0x1aa   :  { %vm279_vm8 = vcmp.lt.s32.totalorder %v278_v5, 0 }
 0x1ab   :  { %v225_v7 = vsel %vm279_vm8, 0, %v278_v5 }
 0x1ac   :  { %v226_v9 = vsub.s32 32, %v225_v7  ;;  %v230_v10 = vsub.s32 4294967266, %v225_v7  ;;  %v227_v11 = vshll.u32 %v218_v1, %v225_v7 }
 0x1ae   :  { %v228_v13 = vshrl.u32 %v210_v8, %v226_v9  ;;  %v231_v14 = vadd.s32 127, %v230_v10 }
 0x1b0   :  { %v229_v15 = vor.u32 %v228_v13, %v227_v11  ;;  %v232_v16 = vshll.u32 %v231_v14, 23 }
 0x1b2   :  { %v233_v17 = vor.u32 4788187, %v232_v16  ;;  %v236_v19 = vcvt.s32.f32 %v229_v15 }
 0x1b4   :  { %v234_v18 = vand.u32 2147483647, %v233_v17 }
 0x1b6   :  { %v237_v20 = vmul.f32 %v236_v19, %v234_v18 }
 0x1b8   :  { %v238_v21 = vxor.u32 2147483648, %v237_v20 }
 0x1ba   :  { %v239_v22 = vsel %vm156_vm9, %v238_v21, %v237_v20 }
 0x1bb   :  { %v242_v24 = vsel %vm155_vm10, %v436_v6, %v239_v22 }
 0x1bc   :  { %302 = vcosq.f32 %v242_v24 }
 0x1bd   :  { %304 = vsinq.f32 %v242_v24 }
 0x1c6   :  { %v303_v28 = vpop.eup %302 }
 0x1c7   :  { %v305_v29 = vpop.eup %304  ;;  %v253_v30 = vxor.u32 2147483648, %v303_v28 }
 0x1c8   :  { %v250_v31 = vxor.u32 2147483648, %v305_v29 }
 0x1c9   :  { %v254_v32 = vsel %vm252_vm11, %v253_v30, %v305_v29 }
 0x1ca   :  { %v251_v33 = vsel %vm249_vm12, %v303_v28, %v250_v31 }
 0x1cb   :  { %v255_v12 = vsel %vm248_vm13, %v251_v33, %v254_v32 }
 0x1cc   :  { %v256_v34 = vsel %vm246_vm14, nan, %v255_v12 }
 0x1cd   :  { %257 = vst [vmem:[#allocation7] sm:$0xff] %v256_v34 }
 0x1ce   :  { %361 = shalt.err (!%p358_p6)
}
 0x1cf   :  { %s362_s13 = scalar_lea.hbm %s472_s3, 128 }
 0x1d0   :  { %p363_p7 = scmp.ne.s32.totalorder %s472_s3, %s362_s13  ;;  %p366_p8 = scmp.lt.u32.totalorder %s362_s13, %s472_s3 }
 0x1d2   :  { %p368_p9 = pnand %p366_p8, %p363_p7 }
 0x1d4   :  { %371 = shalt.err (!%p368_p9)
}
 0x1d5   :  { %267 = dma.vmem_to_hbm [thread:$0]  %s265_s2, 128, %s472_s3, [#allocation4]  }
 0x1d6   :  { %376 = dma.done.wait [#allocation4], 128  }
 0x1d7   :  { %377 = vsyncadd [#allocation4], 4294967168 }
 0x1d8   :  { %271 = vsyncpa [#allocation3], 1 }
 0x1d9   :  { %272 = vsyncpa [#allocation6], 1 }
 0x1da   :  { %273 = vsyncpa [#allocation4], 1 }

</bundles_post_ra>
